<compile_context>
chip_gen: v6e
topology: v6e:2x2x1
jax: 0.10.0
libtpu: 0.0.40
codegen_flags: <defaults>
</compile_context>

<pallas_src>
import functools

import jax
import jax.numpy as jnp
from jax.experimental import pallas as pl
from jax.experimental.pallas import tpu as pltpu


# --------------------------- init-time param packing -------------------------

def _round_up(n, m):
    return (n + m - 1) // m * m


def pack_user_init_params(w1, b1, w2, b2, dx):
    """Pack (w1, b1, w2, b2) into one sublane-aligned f32 slab.

    Done once at init time, so the per-call pallas_call has only 3 operands
    (x, x1, slab).  Slab lane width = 2*ch; each block starts at a multiple of
    8 rows so every in-kernel slice is sublane-aligned (no relayout copies).
    """
    in_dim, hidden = w1.shape            # hidden = 2*ch
    ch = w2.shape[1]
    d1 = in_dim - dx

    dx_p = _round_up(dx, 8)
    d1_p = _round_up(d1, 8)
    h_p = _round_up(hidden, 8)

    off_w1a = 0
    off_w1b = off_w1a + dx_p
    off_b1 = off_w1b + d1_p
    off_w2 = off_b1 + 8
    off_b2 = off_w2 + h_p
    rows = off_b2 + 8

    slab = jnp.zeros((rows, hidden), jnp.float32)
    slab = slab.at[off_w1a:off_w1a + dx, :].set(w1[:dx, :].astype(jnp.float32))
    slab = slab.at[off_w1b:off_w1b + d1, :].set(w1[dx:, :].astype(jnp.float32))
    slab = slab.at[off_b1, :].set(b1.reshape(-1).astype(jnp.float32))
    slab = slab.at[off_w2:off_w2 + hidden, :ch].set(w2.astype(jnp.float32))
    slab = slab.at[off_b2, :ch].set(b2.reshape(-1).astype(jnp.float32))

    meta = dict(dx=dx, d1=d1, ch=ch, hidden=hidden,
                off_w1b=off_w1b, off_b1=off_b1,
                off_w2=off_w2, off_b2=off_b2)
    return slab, meta


# ----------------------------- Pallas kernel --------------------------------

def _user_init_kernel(x_ref, x1_ref, p_ref, out_ref, *,
                      dx, d1, ch, hidden, off_w1b, off_b1, off_w2, off_b2):
    # Static, 8-row-aligned slices of the packed parameter slab (views only).
    w1a = p_ref[0:dx, :]                          # (dx, 2ch)
    w1b = p_ref[off_w1b:off_w1b + d1, :]          # (d1, 2ch)
    b1 = p_ref[off_b1:off_b1 + 1, :]              # (1, 2ch)
    w2 = p_ref[off_w2:off_w2 + hidden, 0:ch]      # (2ch, ch)
    b2 = p_ref[off_b2:off_b2 + 1, 0:ch]           # (1, ch)

    # First Linear with the torch.cat folded into the row split of W1:
    #   cat([x, x1], 1) @ W1  ==  x @ W1[:dx] + x1 @ W1[dx:]
    h = (jnp.dot(x_ref[...], w1a, preferred_element_type=jnp.float32)
         + jnp.dot(x1_ref[...], w1b, preferred_element_type=jnp.float32)
         + b1)
    h = jnp.maximum(h, 0.0)                       # ReLU (VPU)

    # Second Linear + single full-tile store of the (B, ch) output.
    out_ref[...] = jnp.dot(h, w2, preferred_element_type=jnp.float32) + b2


# ------------------------------- wrapper -------------------------------------

def user_init_forward(x, channel_bs_user, packed_params, meta):
    """Equivalent of user_init.forward.

    x:               (B, ...)  flattened internally to (B, 2*M*N)
    channel_bs_user: (B, ...)  flattened internally to (B, 2*M)
    packed_params:   slab from pack_user_init_params (built once at init)
    returns:         (B, ch)
    """
    B = x.shape[0]
    x_flat = x.reshape(B, -1)                 # (B, 2*M*N) -- free reshape
    x1_flat = channel_bs_user.reshape(B, -1)  # (B, 2*M)   -- free reshape

    dx, d1, ch, hidden = meta["dx"], meta["d1"], meta["ch"], meta["hidden"]
    assert x_flat.shape[1] == dx and x1_flat.shape[1] == d1

    flops = 2 * B * (dx + d1) * hidden + 2 * B * hidden * ch
    bytes_accessed = 4 * (x_flat.size + x1_flat.size + packed_params.size + B * ch)

    vmem = pl.BlockSpec(memory_space=pltpu.MemorySpace.VMEM)
    kernel = functools.partial(
        _user_init_kernel, dx=dx, d1=d1, ch=ch, hidden=hidden,
        off_w1b=meta["off_w1b"], off_b1=meta["off_b1"],
        off_w2=meta["off_w2"], off_b2=meta["off_b2"])

    return pl.pallas_call(
        kernel,
        out_shape=jax.ShapeDtypeStruct((B, ch), jnp.float32),
        in_specs=[vmem, vmem, vmem],           # 3 operands: x, x1, param slab
        out_specs=vmem,
        cost_estimate=pl.CostEstimate(
            flops=flops, transcendentals=0, bytes_accessed=bytes_accessed),
    )(x_flat, x1_flat, packed_params)


# -------------------------- pure-JAX reference --------------------------------

def user_init_reference(x, channel_bs_user, params):
    B = x.shape[0]
    xc = jnp.concatenate([x.reshape(B, -1), channel_bs_user.reshape(B, -1)], axis=1)
    h = jnp.maximum(xc @ params["w1"] + params["b1"], 0.0)
    return h @ params["w2"] + params["b2"]


# ------------------------------- main -----------------------------------------

if __name__ == "__main__":
    # Module hyper-params (small, consistent with the forward pass)
    M, N, ch = 8, 4, 32
    B = 2
    dx = 2 * M * N            # flattened size of x        (64)
    d1 = 2 * M                # flattened size of x1       (16)
    in_dim = dx + d1          # 80

    key = jax.random.PRNGKey(0)
    ks = jax.random.split(key, 8)

    # Inputs: anything that reshapes to (B, 2*M*N) and (B, 2*M)
    x = jax.random.normal(ks[0], (B, 2, M, N), jnp.float32)             # -> (B, 64)
    channel_bs_user = jax.random.normal(ks[1], (B, 2, M), jnp.float32)  # -> (B, 16)

    # Parameters (PyTorch Linear(out, in) weights stored pre-transposed as (in, out))
    params = {
        "w1": 0.1 * jax.random.normal(ks[2], (in_dim, 2 * ch), jnp.float32),
        "b1": 0.1 * jax.random.normal(ks[3], (1, 2 * ch), jnp.float32),
        "w2": 0.1 * jax.random.normal(ks[4], (2 * ch, ch), jnp.float32),
        "b2": 0.1 * jax.random.normal(ks[5], (1, ch), jnp.float32),
    }

    # One-time packing (init time): 6 operands -> 1 sublane-aligned slab.
    packed, meta = pack_user_init_params(
        params["w1"], params["b1"], params["w2"], params["b2"], dx)
    packed = jax.block_until_ready(packed)

    out = user_init_forward(x, channel_bs_user, packed, meta)
    out = jax.block_until_ready(out)

    ref = user_init_reference(x, channel_bs_user, params)
    assert out.shape == (B, ch), out.shape
    assert jnp.allclose(out, ref, atol=1e-4, rtol=1e-4), "mismatch vs reference"

    print("KERNEL_OK")
</pallas_src>

<mosaic_0001>
module attributes {stable_mosaic.version = 11 : i64} {
  func.func @_user_init_kernel(%arg0: memref<2x64xf32, #tpu.memory_space<vmem>>, %arg1: memref<2x16xf32, #tpu.memory_space<vmem>>, %arg2: memref<160x64xf32, #tpu.memory_space<vmem>>, %arg3: memref<2x32xf32, #tpu.memory_space<vmem>>) attributes {dimension_semantics = [], scalar_prefetch = 0 : i64, scratch_operands = 0 : i64, tpu.core_type = #tpu.core_type<tc>} {
    %c0 = arith.constant 0 : index
    %c0_0 = arith.constant 0 : index
    %0 = vector.load %arg2[%c0, %c0_0] : memref<160x64xf32, #tpu.memory_space<vmem>>, vector<64x64xf32>
    %c64 = arith.constant 64 : index
    %c0_1 = arith.constant 0 : index
    %1 = vector.load %arg2[%c64, %c0_1] : memref<160x64xf32, #tpu.memory_space<vmem>>, vector<16x64xf32>
    %c80 = arith.constant 80 : index
    %c0_2 = arith.constant 0 : index
    %2 = vector.load %arg2[%c80, %c0_2] : memref<160x64xf32, #tpu.memory_space<vmem>>, vector<1x64xf32>
    %c88 = arith.constant 88 : index
    %c0_3 = arith.constant 0 : index
    %3 = vector.load %arg2[%c88, %c0_3] : memref<160x64xf32, #tpu.memory_space<vmem>>, vector<64x32xf32>
    %c152 = arith.constant 152 : index
    %c0_4 = arith.constant 0 : index
    %4 = vector.load %arg2[%c152, %c0_4] : memref<160x64xf32, #tpu.memory_space<vmem>>, vector<1x32xf32>
    %c0_5 = arith.constant 0 : index
    %c0_6 = arith.constant 0 : index
    %5 = vector.load %arg0[%c0_5, %c0_6] : memref<2x64xf32, #tpu.memory_space<vmem>>, vector<2x64xf32>
    %cst = arith.constant dense<0.000000e+00> : vector<2x64xf32>
    %6 = tpu.matmul %5, %0, %cst {dimension_numbers = #tpu.dot_dimension_numbers<[1], [0], [0], [1], [0, 0, 1, 1], [], []>} : vector<2x64xf32>, vector<64x64xf32>, vector<2x64xf32> -> vector<2x64xf32>
    %c0_7 = arith.constant 0 : index
    %c0_8 = arith.constant 0 : index
    %7 = vector.load %arg1[%c0_7, %c0_8] : memref<2x16xf32, #tpu.memory_space<vmem>>, vector<2x16xf32>
    %cst_9 = arith.constant dense<0.000000e+00> : vector<2x64xf32>
    %8 = tpu.matmul %7, %1, %cst_9 {dimension_numbers = #tpu.dot_dimension_numbers<[1], [0], [0], [1], [0, 0, 1, 1], [], []>} : vector<2x16xf32>, vector<16x64xf32>, vector<2x64xf32> -> vector<2x64xf32>
    %9 = arith.addf %6, %8 : vector<2x64xf32>
    %10 = vector.broadcast %2 : vector<1x64xf32> to vector<2x64xf32>
    %11 = arith.addf %9, %10 : vector<2x64xf32>
    %cst_10 = arith.constant 0.000000e+00 : f32
    %12 = vector.broadcast %cst_10 : f32 to vector<2x64xf32>
    %13 = arith.maximumf %11, %12 : vector<2x64xf32>
    %cst_11 = arith.constant dense<0.000000e+00> : vector<2x32xf32>
    %14 = tpu.matmul %13, %3, %cst_11 {dimension_numbers = #tpu.dot_dimension_numbers<[1], [0], [0], [1], [0, 0, 1, 1], [], []>} : vector<2x64xf32>, vector<64x32xf32>, vector<2x32xf32> -> vector<2x32xf32>
    %15 = vector.broadcast %4 : vector<1x32xf32> to vector<2x32xf32>
    %16 = arith.addf %14, %15 : vector<2x32xf32>
    %c0_12 = arith.constant 0 : index
    %c0_13 = arith.constant 0 : index
    %17 = vector.load %arg3[%c0_12, %c0_13] : memref<2x32xf32, #tpu.memory_space<vmem>>, vector<2x32xf32>
    tpu.vector_store %arg3[%c0_12, %c0_13], %16 {strides = array<i32>} : memref<2x32xf32, #tpu.memory_space<vmem>>, vector<2x32xf32>,
    return
  }
}

</mosaic_0001>

<bundles_post_ra>
// kernel: tpu_custom_call.1
= control target key start
LH: loop header
LB: loop body
LE: loop exit
PB: predicated region body
PF: predicated region fallthrough
CT: control target
= control target key end

     0   :  { %v380_v1 = vmov 0.0   ;;  %vm37_vm0 = vcmask 130048   ;;  %vm381_vm1 = vmmov 0   ;;  %s477_s0 = inlined_call_operand.vmem [shape: f32[2,64], index: 0, kind: input, shape index: {}]   ;;  %s478_s1 = inlined_call_operand.vmem [shape: f32[2,16], index: 1, kind: input, shape index: {}]   ;;  %s479_s2 = inlined_call_operand.vmem [shape: f32[160,64], index: 2, kind: input, shape index: {}]   ;;  %s480_s3 = inlined_call_operand.hbm [shape: f32[2,32], index: 3, kind: output, shape index: {}]  }
   0x1   :  { %v22_v0 = vld [vmem:[%s479_s2 + $0x38] sm:$0xff]  ;;  %317 = vmatprep.subr.mxu1 %v380_v1  ;;  %v21_v2 = vld [vmem:[%s479_s2 + $0x30] sm:$0xff]  ;;  %310 = vmatprep.subr.mxu0 %v380_v1  ;;  %v24_v3 = vld [vmem:[%s479_s2 + $0x48] sm:$0xff] }
   0x2   :  { %318 = vmatpush3.msra.mxu1 %v22_v0  ;;  %311 = vmatpush3.msra.mxu0 %v24_v3  ;;  %v23_v4 = vld [vmem:[%s479_s2 + $0x40] sm:$0xff]  ;;  %v20_v5 = vld [vmem:[%s479_s2 + $0x28] sm:$0xff] }
   0x3   :  { %319 = vmatprep.subr.mxu1 %v380_v1  ;;  %312 = vmatprep.subr.mxu0 %v380_v1  ;;  %v36_v6 = vld [vmem:[%s478_s1] sm:$0x3] }
   0x4   :  { %320 = vmatpush3.msra.mxu1 %v21_v2  ;;  %313 = vmatpush3.msra.mxu0 %v23_v4  ;;  %v19_v7 = vld [vmem:[%s479_s2 + $0x20] sm:$0xff] }
   0x5   :  { %321 = vmatprep.subr.mxu1 %v380_v1  ;;  %314 = vmatprep.mubr.msk.f32.mxu0 %vm381_vm1, %v380_v1 }
   0x6   :  { %8 = vsyncpa [#allocation3], 0  ;;  %322 = vmatpush3.msra.mxu1 %v20_v5  ;;  %315 = vmatmul.mubr.msk.f32.vlgmr.msra.gmra.mxu0 %vm37_vm0, %v36_v6  ;;  %v33_v8 = vld [vmem:[%s479_s2 + $0x90] sm:$0xff]  ;;  %v18_v9 = vld [vmem:[%s479_s2 + $0x18] sm:$0xff]  ;;  %vm111_vm2 = vcmask 523264   ;;  %s382_s27 = smov [#allocation2]  }
   0x7   :  { %323 = vmatprep.subr.mxu1 %v380_v1  ;;  %333 = vmatprep.mubr.msk.f32.mxu1 %vm381_vm1, %v380_v1  ;;  %v32_v10 = vld [vmem:[%s479_s2 + $0x88] sm:$0xff]  ;;  %v17_v11 = vld [vmem:[%s479_s2 + $0x10] sm:$0xff]  ;;  %v31_v12 = vld [vmem:[%s479_s2 + $0x80] sm:$0xff]  ;;  %s276_s1 = sshll.u32 %s382_s27, 4  ;;  %vm268_vm3 = vcmask 254976   ;;  %s277_s1 = int_to_ptr.vmem [resolvable:$true] %s276_s1 }
   0x8   :  { %324 = vmatpush3.msra.mxu1 %v19_v7  ;;  %336 = vmatprep.subr.mxu0 %v380_v1  ;;  %v16_v13 = vld [vmem:[%s479_s2 + $0x8] sm:$0xff]  ;;  %v15_v14 = vld [vmem:[%s479_s2] sm:$0xff]  ;;  %v30_v16 = vld [vmem:[%s479_s2 + $0x78] sm:$0xff]  ;;  %s358_s28 = scalar_lea.vmem %s277_s1, 32  ;;  %p363_p1 = scmp.lt.s32.totalorder %s277_s1, %s277_s1 }
   0x9   :  { %325 = vmatprep.subr.mxu1 %v380_v1  ;;  %337 = vmatpush3.msra.mxu0 %v33_v8  ;;  %v35_v15 = vld [vmem:[%s477_s0] sm:$0x3]  ;;  %v29_v17 = vld [vmem:[%s479_s2 + $0x70] sm:$0xff]  ;;  %v28_v18 = vld [vmem:[%s479_s2 + $0x68] sm:$0xff]  ;;  %p359_p0 = scmp.ne.s32.totalorder %s277_s1, %s358_s28  ;;  %p364_p2 = scmp.lt.s32.totalorder %s358_s28, %s358_s28 }
   0xa   :  { %326 = vmatpush3.msra.mxu1 %v18_v9  ;;  %338 = vmatprep.subr.mxu0 %v380_v1  ;;  %v27_v19 = vld [vmem:[%s479_s2 + $0x60] sm:$0xff]  ;;  %v26_v20 = vld [vmem:[%s479_s2 + $0x58] sm:$0xff]  ;;  %v286_v23 = vld [vmem:[%s479_s2 + $0x50] ss:$0 sm:$0xff] }
   0xb   :  { %327 = vmatprep.subr.mxu1 %v380_v1  ;;  %339 = vmatpush3.msra.mxu0 %v32_v10  ;;  %v287_v29 = vld [vmem:[%s479_s2 + $0x98] ss:$0 sm:$0xff]  ;;  %p365_p3 = por %p364_p2, %p363_p1 }
   0xc   :  { %328 = vmatpush3.msra.mxu1 %v17_v11  ;;  %340 = vmatprep.subr.mxu0 %v380_v1 }
   0xd   :  { %329 = vmatprep.subr.mxu1 %v380_v1  ;;  %341 = vmatpush3.msra.mxu0 %v31_v12  ;;  %p366_p4 = pnand %p365_p3, %p359_p0 }
   0xe   :  { %330 = vmatpush3.msra.mxu1 %v16_v13  ;;  %342 = vmatprep.subr.mxu0 %v380_v1 }
   0xf   :  { %331 = vmatprep.subr.mxu1 %v380_v1  ;;  %352 = vmatprep.mubr.msk.f32.mxu0 %vm381_vm1, %v380_v1 }
  0x10   :  { %332 = vmatpush3.msra.mxu1 %v15_v14  ;;  %343 = vmatpush3.msra.mxu0 %v30_v16 }
  0x11   :  { %334 = vmatmul.mubr.msk.f32.vlgmr.msra.gmra.mxu1 %vm111_vm2, %v35_v15  ;;  %344 = vmatprep.subr.mxu0 %v380_v1 }
  0x12   :  { %345 = vmatpush3.msra.mxu0 %v29_v17 }
  0x13   :  { %346 = vmatprep.subr.mxu0 %v380_v1 }
  0x14   :  { %347 = vmatpush3.msra.mxu0 %v28_v18 }
  0x15   :  { %348 = vmatprep.subr.mxu0 %v380_v1 }
  0x16   :  { %349 = vmatpush3.msra.mxu0 %v27_v19 }
  0x17   :  { %350 = vmatprep.subr.mxu0 %v380_v1 }
  0x18   :  { %351 = vmatpush3.msra.mxu0 %v26_v20 }
  0xc6   :  { %v107_v21 = vpop.f32.mrf.mxu0 }
  0xc8   :  { %v316_v22 = vpop.f32.mrf.mxu0 }
  0xd1   :  { %v181_v24 = vpop.f32.mrf.mxu1 }
  0xd2   :  { %v182_v25 = vadd.f32 %v181_v24, %v107_v21 }
  0xd3   :  { %v335_v26 = vpop.f32.mrf.mxu1 }
  0xd4   :  { %v189_v27 = vadd.f32 %v286_v23, %v182_v25 }
  0xd6   :  { %v190_v28 = vmax.f32 %v189_v27, 0.0 }
  0xd8   :  { %353 = vmatmul.mubr.msk.f32.vlgmr.msra.gmra.mxu0 %vm111_vm2, %v190_v28 }
 0x198   :  { %v264_v30 = vpop.f32.mrf.mxu0 }
 0x199   :  { %v265_v31 = vadd.f32 %v287_v29, %v264_v30 }
 0x19a   :  { %v354_v32 = vpop.f32.mrf.mxu0 }
 0x19b   :  { %269 = vst.msk [vmem:[#allocation2] sm:$0x3] %vm268_vm3, %v265_v31 }
 0x19c   :  { %369 = shalt.err (!%p366_p4)
}
 0x19d   :  { %279 = dma.vmem_to_hbm [thread:$0]  %s277_s1, 32, %s480_s3, [#allocation3]  }
 0x19e   :  { %378 = dma.done.wait [#allocation3], 32  }
 0x19f   :  { %379 = vsyncadd [#allocation3], 4294967264 }
 0x1a0   :  { %283 = vsyncpa [#allocation3], 1 }

</bundles_post_ra>
